<compile_context>
chip_gen: v5e
topology: v5e:2x2
jax: 0.10.0
libtpu: 0.0.40
codegen_flags: <defaults>
</compile_context>

<pallas_src>
from functools import partial

import jax
import jax.numpy as jnp
from jax.experimental import pallas as pl
from jax.experimental.pallas import tpu as pltpu


def linear_relu_kernel(x_ref, w_ref, b_ref, o_ref):
    # x_ref: (TM, 784) f32, w_ref: (784, N) bf16, b_ref: (1, N) f32, o_ref: (TM, N) f32
    x = x_ref[...].astype(jnp.bfloat16)          # cast on VPU (slack) -> full-rate MXU
    y = jnp.dot(x, w_ref[...], preferred_element_type=jnp.float32)
    y = y + b_ref[...]                           # broadcast bias add (f32)
    o_ref[...] = jnp.maximum(y, 0.0).astype(o_ref.dtype)


def _round_up(x, m):
    return (x + m - 1) // m * m


def prepare_params(w, b):
    """One-time parameter prep: W -> bf16 (halves per-call W traffic), bias -> (1, N) f32."""
    w_bf16 = w.astype(jnp.bfloat16)              # (784, N)
    b_row = b.astype(jnp.float32).reshape(1, -1)  # (1, N)
    return w_bf16, b_row


@jax.jit
def model_forward(x_nchw, w_bf16, b_row):
    """x_nchw: (B, 1, 28, 28) f32; w_bf16: (784, N) bf16; b_row: (1, N) f32. Returns (B, N) f32."""
    B = x_nchw.shape[0]
    K = w_bf16.shape[0]          # 784
    N = w_bf16.shape[1]

    # ---- batch tiling: minimal row padding, >=2 grid steps when possible ----
    B8 = _round_up(B, 8)
    max_tile = 512                                # fat tiles for v5e/v6e HBM roofline
    n_tiles = max(1, -(-B8 // max_tile))          # ceil(B8 / max_tile)
    if B8 >= 16:
        n_tiles = max(n_tiles, 2)                 # >=2 grid steps -> both v7x TCs
    TM = _round_up(-(-B8 // n_tiles), 8)          # rows per tile (multiple of 8)
    B_pad = n_tiles * TM                          # waste <= 8 * n_tiles rows

    x_flat = x_nchw.reshape(B, K).astype(jnp.float32)
    if B_pad != B:
        x_flat = jnp.pad(x_flat, ((0, B_pad - B), (0, 0)))

    out = pl.pallas_call(
        linear_relu_kernel,
        out_shape=jax.ShapeDtypeStruct((B_pad, N), jnp.float32),
        grid_spec=pltpu.PrefetchScalarGridSpec(
            num_scalar_prefetch=0,
            grid=(n_tiles,),
            in_specs=[
                pl.BlockSpec((TM, K), lambda i: (i, 0)),   # x tile (pipelined over batch)
                pl.BlockSpec((K, N), lambda i: (0, 0)),    # W, VMEM-resident
                pl.BlockSpec((1, N), lambda i: (0, 0)),    # bias, VMEM-resident
            ],
            out_specs=pl.BlockSpec((TM, N), lambda i: (i, 0)),
        ),
        compiler_params=pltpu.CompilerParams(
            dimension_semantics=("parallel",),   # batch axis -> both TCs on v7x
        ),
    )(x_flat, w_bf16, b_row)

    return out[:B]


if __name__ == "__main__":
    # Small, deterministic setup consistent with the module.
    B = 2          # batch (PyTorch example used 1; small batch works the same)
    IN = 28 * 28   # 784
    N = 32         # Linear output features

    key = jax.random.PRNGKey(0)
    kx, kw, kb = jax.random.split(key, 3)

    # Input in NCHW like the PyTorch example: (B, 1, 28, 28)
    x1 = jax.random.normal(kx, (B, 1, 28, 28), dtype=jnp.float32)

    # Deterministic "Linear" parameters: W stored as (IN, N), bias (N,)
    bound = 1.0 / jnp.sqrt(IN)
    w = jax.random.uniform(kw, (IN, N), dtype=jnp.float32, minval=-bound, maxval=bound)
    b = jax.random.uniform(kb, (N,), dtype=jnp.float32, minval=-bound, maxval=bound)

    # One-time parameter prep (hoisted out of the per-call path).
    w_bf16, b_row = prepare_params(w, b)

    out = model_forward(x1, w_bf16, b_row)
    out = jax.block_until_ready(out)
    assert out.shape == (B, N)

    # Reference 1: same bf16-cast operands, f32 accumulate (tight tolerance)
    x_bf = x1.reshape(B, IN).astype(jnp.bfloat16).astype(jnp.float32)
    w_bf = w.astype(jnp.bfloat16).astype(jnp.float32)
    ref_bf = jnp.maximum(x_bf @ w_bf + b, 0.0)
    assert jnp.allclose(out, ref_bf, atol=2e-3, rtol=2e-3)

    # Reference 2: full f32 reference (loose tolerance, bf16 rounding)
    ref_f32 = jnp.maximum(x1.reshape(B, IN) @ w + b, 0.0)
    assert jnp.allclose(out, ref_f32, atol=2e-2, rtol=2e-2)

    print("KERNEL_OK")
</pallas_src>

<mosaic_0001>
module attributes {stable_mosaic.version = 11 : i64} {
  func.func @linear_relu_kernel(%arg0: i32, %arg1: memref<8x784xf32, #tpu.memory_space<vmem>>, %arg2: memref<784x32xbf16, #tpu.memory_space<vmem>>, %arg3: memref<1x32xf32, #tpu.memory_space<vmem>>, %arg4: memref<8x32xf32, #tpu.memory_space<vmem>>) attributes {dimension_semantics = [#tpu.dimension_semantics<parallel>], iteration_bounds = array<i64: 1>, scalar_prefetch = 0 : i64, scratch_operands = 0 : i64, tpu.core_type = #tpu.core_type<tc>, window_params = [{transform_indices = @transform_0, window_bounds = array<i64: 8, 784>}, {pipeline_mode = #tpu.pipeline_mode<synchronous>, transform_indices = @transform_1, window_bounds = array<i64: 784, 32>}, {pipeline_mode = #tpu.pipeline_mode<synchronous>, transform_indices = @transform_2, window_bounds = array<i64: 1, 32>}, {transform_indices = @transform_3, window_bounds = array<i64: 8, 32>}]} {
    %c0 = arith.constant 0 : index
    %c0_0 = arith.constant 0 : index
    %0 = vector.load %arg1[%c0, %c0_0] : memref<8x784xf32, #tpu.memory_space<vmem>>, vector<8x784xf32>
    %1 = arith.truncf %0 : vector<8x784xf32> to vector<8x784xbf16>
    %c0_1 = arith.constant 0 : index
    %c0_2 = arith.constant 0 : index
    %2 = vector.load %arg2[%c0_1, %c0_2] : memref<784x32xbf16, #tpu.memory_space<vmem>>, vector<784x32xbf16>
    %cst = arith.constant dense<0.000000e+00> : vector<8x32xf32>
    %3 = tpu.matmul %1, %2, %cst {dimension_numbers = #tpu.dot_dimension_numbers<[1], [0], [0], [1], [0, 0, 1, 1], [], []>} : vector<8x784xbf16>, vector<784x32xbf16>, vector<8x32xf32> -> vector<8x32xf32>
    %c0_3 = arith.constant 0 : index
    %c0_4 = arith.constant 0 : index
    %4 = vector.load %arg3[%c0_3, %c0_4] : memref<1x32xf32, #tpu.memory_space<vmem>>, vector<1x32xf32>
    %5 = vector.broadcast %4 : vector<1x32xf32> to vector<8x32xf32>
    %6 = arith.addf %3, %5 : vector<8x32xf32>
    %cst_5 = arith.constant 0.000000e+00 : f32
    %7 = vector.broadcast %cst_5 : f32 to vector<8x32xf32>
    %8 = arith.maximumf %6, %7 : vector<8x32xf32>
    %c0_6 = arith.constant 0 : index
    %c0_7 = arith.constant 0 : index
    %9 = vector.load %arg4[%c0_6, %c0_7] : memref<8x32xf32, #tpu.memory_space<vmem>>, vector<8x32xf32>
    tpu.vector_store %arg4[%c0_6, %c0_7], %8 {strides = array<i32>} : memref<8x32xf32, #tpu.memory_space<vmem>>, vector<8x32xf32>,
    return
  }
  func.func @transform_0(%arg0: i32) -> (i32, i32) {
    %c0_i32 = arith.constant 0 : i32
    %c0_i32_0 = arith.constant 0 : i32
    return %arg0, %c0_i32 : i32, i32
  }
  func.func @transform_1(%arg0: i32) -> (i32, i32) {
    %c0_i32 = arith.constant 0 : i32
    %c0_i32_0 = arith.constant 0 : i32
    %c0_i32_1 = arith.constant 0 : i32
    return %c0_i32, %c0_i32_0 : i32, i32
  }
  func.func @transform_2(%arg0: i32) -> (i32, i32) {
    %c0_i32 = arith.constant 0 : i32
    %c0_i32_0 = arith.constant 0 : i32
    %c0_i32_1 = arith.constant 0 : i32
    return %c0_i32, %c0_i32_0 : i32, i32
  }
  func.func @transform_3(%arg0: i32) -> (i32, i32) {
    %c0_i32 = arith.constant 0 : i32
    %c0_i32_0 = arith.constant 0 : i32
    return %arg0, %c0_i32 : i32, i32
  }
}

</mosaic_0001>

<bundles_post_ra>
// kernel: model_forward.1
= control target key start
LH: loop header
LB: loop body
LE: loop exit
PB: predicated region body
PF: predicated region fallthrough
CT: control target
= control target key end

     0   :  { %vm425_vm0 = vcmask 130048   ;;  %vm521_vm1 = vcmask 261120   ;;  %s968_s1 = inlined_call_operand.vmem [shape: bf16[784,32], index: 1, kind: input, shape index: {}]   ;;  %s969_s2 = inlined_call_operand.vmem [shape: f32[1,32], index: 2, kind: input, shape index: {}]   ;;  %s970_s0 = inlined_call_operand.vmem [shape: f32[8,784], index: 0, kind: input, shape index: {}]   ;;  %s971_s3 = inlined_call_operand.vmem [shape: f32[8,32], index: 3, kind: output, shape index: {}]  }
   0x1   :  { %v731_v0 = vld [vmem:[%s968_s1 + $0x38] sm:$0xff]  ;;  %v730_v3 = vld [vmem:[%s968_s1 + $0x30] sm:$0xff]  ;;  %v729_v8 = vld [vmem:[%s968_s1 + $0x28] sm:$0xff] }
   0x2   :  { %v739_v1 = vld [vmem:[%s968_s1 + $0x78] sm:$0xff]  ;;  %429 = vmatpush.bf16.msra.mxu0 %v731_v0  ;;  %v738_v4 = vld [vmem:[%s968_s1 + $0x70] sm:$0xff]  ;;  %v737_v9 = vld [vmem:[%s968_s1 + $0x68] sm:$0xff] }
   0x3   :  { %v747_v2 = vld [vmem:[%s968_s1 + $0xb8] sm:$0xff]  ;;  %442 = vmatpush.bf16.msra.mxu1 %v739_v1  ;;  %v746_v5 = vld [vmem:[%s968_s1 + $0xb0] sm:$0xff]  ;;  %v745_v10 = vld [vmem:[%s968_s1 + $0xa8] sm:$0xff] }
   0x4   :  { %455 = vmatpush.bf16.msra.mxu2 %v747_v2  ;;  %v755_v6 = vld [vmem:[%s968_s1 + $0xf8] sm:$0xff]  ;;  %v754_v7 = vld [vmem:[%s968_s1 + $0xf0] sm:$0xff]  ;;  %v753_v11 = vld [vmem:[%s968_s1 + $0xe8] sm:$0xff] }
   0x5   :  { %468 = vmatpush.bf16.msra.mxu3 %v755_v6  ;;  %v728_v12 = vld [vmem:[%s968_s1 + $0x20] sm:$0xff]  ;;  %v727_v16 = vld [vmem:[%s968_s1 + $0x18] sm:$0xff]  ;;  %v726_v20 = vld [vmem:[%s968_s1 + $0x10] sm:$0xff] }
   0x6   :  { %430 = vmatpush.bf16.msra.mxu0 %v730_v3  ;;  %v736_v13 = vld [vmem:[%s968_s1 + $0x60] sm:$0xff]  ;;  %v735_v17 = vld [vmem:[%s968_s1 + $0x58] sm:$0xff]  ;;  %v734_v21 = vld [vmem:[%s968_s1 + $0x50] sm:$0xff] }
   0x7   :  { %443 = vmatpush.bf16.msra.mxu1 %v738_v4  ;;  %v744_v14 = vld [vmem:[%s968_s1 + $0xa0] sm:$0xff]  ;;  %v743_v18 = vld [vmem:[%s968_s1 + $0x98] sm:$0xff]  ;;  %v742_v22 = vld [vmem:[%s968_s1 + $0x90] sm:$0xff] }
   0x8   :  { %456 = vmatpush.bf16.msra.mxu2 %v746_v5  ;;  %v752_v15 = vld [vmem:[%s968_s1 + $0xe0] sm:$0xff]  ;;  %v751_v19 = vld [vmem:[%s968_s1 + $0xd8] sm:$0xff]  ;;  %v750_v23 = vld [vmem:[%s968_s1 + $0xd0] sm:$0xff] }
   0x9   :  { %469 = vmatpush.bf16.msra.mxu3 %v754_v7  ;;  %v725_v24 = vld [vmem:[%s968_s1 + $0x8] sm:$0xff]  ;;  %v724_v27 = vld [vmem:[%s968_s1] sm:$0xff]  ;;  %v763_v33 = vld [vmem:[%s968_s1 + $0x138] sm:$0xff] }
   0xa   :  { %431 = vmatpush.bf16.msra.mxu0 %v729_v8  ;;  %v733_v25 = vld [vmem:[%s968_s1 + $0x48] sm:$0xff]  ;;  %v732_v29 = vld [vmem:[%s968_s1 + $0x40] sm:$0xff]  ;;  %v17_v34 = vld [vmem:[%s970_s0 + $0x10] sm:$0xff] }
   0xb   :  { %444 = vmatpush.bf16.msra.mxu1 %v737_v9  ;;  %v741_v26 = vld [vmem:[%s968_s1 + $0x88] sm:$0xff]  ;;  %v15_v30 = vld [vmem:[%s970_s0] sm:$0xff]  ;;  %v771_v35 = vld [vmem:[%s968_s1 + $0x178] sm:$0xff]  ;;  %v24_v39 = vpack.c.bf16 %v17_v34, %v17_v34 }
   0xc   :  { %457 = vmatpush.bf16.msra.mxu2 %v745_v10  ;;  %v749_v28 = vld [vmem:[%s968_s1 + $0xc8] sm:$0xff]  ;;  %v740_v32 = vld [vmem:[%s968_s1 + $0x80] sm:$0xff]  ;;  %v22_v37 = vpack.c.bf16 %v15_v30, %v15_v30  ;;  %v18_v41 = vld [vmem:[%s970_s0 + $0x18] sm:$0xff] }
   0xd   :  { %470 = vmatpush.bf16.msra.mxu3 %v753_v11  ;;  %v16_v31 = vld [vmem:[%s970_s0 + $0x8] sm:$0xff]  ;;  %v772_v36 = vld [vmem:[%s968_s1 + $0x180] sm:$0xff]  ;;  %v762_v42 = vld [vmem:[%s968_s1 + $0x130] sm:$0xff]  ;;  %v25_v44 = vpack.c.bf16 %v18_v41, %v18_v41 }
   0xe   :  { %432 = vmatpush.bf16.msra.mxu0 %v728_v12  ;;  %v23_v38 = vpack.c.bf16 %v16_v31, %v16_v31  ;;  %v748_v40 = vld [vmem:[%s968_s1 + $0xc0] sm:$0xff]  ;;  %v770_v43 = vld [vmem:[%s968_s1 + $0x170] sm:$0xff]  ;;  %v761_v45 = vld [vmem:[%s968_s1 + $0x128] sm:$0xff] }
   0xf   :  { %445 = vmatpush.bf16.msra.mxu1 %v736_v13  ;;  %v769_v46 = vld [vmem:[%s968_s1 + $0x168] sm:$0xff]  ;;  %v760_v47 = vld [vmem:[%s968_s1 + $0x120] sm:$0xff]  ;;  %v759_v49 = vld [vmem:[%s968_s1 + $0x118] sm:$0xff] }
  0x10   :  { %458 = vmatpush.bf16.msra.mxu2 %v744_v14  ;;  %v768_v48 = vld [vmem:[%s968_s1 + $0x160] sm:$0xff]  ;;  %v21_v50 = vld [vmem:[%s970_s0 + $0x30] sm:$0xff]  ;;  %v767_v51 = vld [vmem:[%s968_s1 + $0x158] sm:$0xff] }
  0x11   :  { %471 = vmatpush.bf16.msra.mxu3 %v752_v15  ;;  %v28_v52 = vpack.c.bf16 %v21_v50, %v21_v50  ;;  %v758_v53 = vld [vmem:[%s968_s1 + $0x110] sm:$0xff]  ;;  %v757_v55 = vld [vmem:[%s968_s1 + $0x108] sm:$0xff]  ;;  %v756_v57 = vld [vmem:[%s968_s1 + $0x100] sm:$0xff] }
  0x12   :  { %433 = vmatpush.bf16.msra.mxu0 %v727_v16  ;;  %v766_v54 = vld [vmem:[%s968_s1 + $0x150] sm:$0xff]  ;;  %v765_v56 = vld [vmem:[%s968_s1 + $0x148] sm:$0xff]  ;;  %v19_v58 = vld [vmem:[%s970_s0 + $0x20] sm:$0xff] }
  0x13   :  { %446 = vmatpush.bf16.msra.mxu1 %v735_v17  ;;  %v764_v59 = vld [vmem:[%s968_s1 + $0x140] sm:$0xff]  ;;  %v20_v60 = vld [vmem:[%s970_s0 + $0x28] sm:$0xff]  ;;  %v26_v61 = vpack.c.bf16 %v19_v58, %v19_v58 }
  0x14   :  { %459 = vmatpush.bf16.msra.mxu2 %v743_v18  ;;  %v27_v62 = vpack.c.bf16 %v20_v60, %v20_v60  ;;  %v773_v5 = vld [vmem:[%s969_s2] ss:$0 sm:$0xff] }
  0x15   :  { %472 = vmatpush.bf16.msra.mxu3 %v751_v19 }
  0x16   :  { %434 = vmatpush.bf16.msra.mxu0 %v726_v20 }
  0x17   :  { %447 = vmatpush.bf16.msra.mxu1 %v734_v21 }
  0x18   :  { %460 = vmatpush.bf16.msra.mxu2 %v742_v22 }
  0x19   :  { %473 = vmatpush.bf16.msra.mxu3 %v750_v23 }
  0x1a   :  { %435 = vmatpush.bf16.msra.mxu0 %v725_v24 }
  0x1b   :  { %448 = vmatpush.bf16.msra.mxu1 %v733_v25 }
  0x1c   :  { %461 = vmatpush.bf16.msra.mxu2 %v741_v26 }
  0x1d   :  { %474 = vmatpush.bf16.msra.mxu3 %v749_v28 }
  0x1e   :  { %436 = vmatpush.bf16.msra.mxu0 %v724_v27 }
  0x1f   :  { %449 = vmatpush.bf16.msra.mxu1 %v732_v29 }
  0x20   :  { %462 = vmatpush.bf16.msra.mxu2 %v740_v32 }
  0x21   :  { %437 = vmatmul.bf16.vlgmr.msra.gmra.mxu0 %v22_v37  ;;  %475 = vmatpush.bf16.msra.mxu3 %v748_v40 }
  0x22   :  { %481 = vmatpush.bf16.msrb.mxu0 %v763_v33  ;;  %450 = vmatmul.bf16.vlgmr.msra.gmra.mxu1 %v23_v38 }
  0x23   :  { %494 = vmatpush.bf16.msrb.mxu1 %v771_v35  ;;  %463 = vmatmul.bf16.vlgmr.msra.gmra.mxu2 %v24_v39 }
  0x24   :  { %514 = vmatpush.bf16.msrb.mxu2 %v772_v36  ;;  %476 = vmatmul.bf16.vlgmr.msra.gmra.mxu3 %v25_v44 }
  0x26   :  { %482 = vmatpush.bf16.msrb.mxu0 %v762_v42 }
  0x27   :  { %495 = vmatpush.bf16.msrb.mxu1 %v770_v43 }
  0x2a   :  { %483 = vmatpush.bf16.msrb.mxu0 %v761_v45 }
  0x2b   :  { %496 = vmatpush.bf16.msrb.mxu1 %v769_v46 }
  0x2e   :  { %484 = vmatpush.bf16.msrb.mxu0 %v760_v47 }
  0x2f   :  { %497 = vmatpush.bf16.msrb.mxu1 %v768_v48 }
  0x32   :  { %485 = vmatpush.bf16.msrb.mxu0 %v759_v49 }
  0x33   :  { %498 = vmatpush.bf16.msrb.mxu1 %v767_v51  ;;  %723 = vmatmul.msk.bf16.vlgmr.msrb.gmra.mxu2 %vm425_vm0, %v28_v52 }
  0x36   :  { %486 = vmatpush.bf16.msrb.mxu0 %v758_v53 }
  0x37   :  { %499 = vmatpush.bf16.msrb.mxu1 %v766_v54 }
  0x3a   :  { %487 = vmatpush.bf16.msrb.mxu0 %v757_v55 }
  0x3b   :  { %500 = vmatpush.bf16.msrb.mxu1 %v765_v56 }
  0x3e   :  { %488 = vmatpush.bf16.msrb.mxu0 %v756_v57 }
  0x3f   :  { %501 = vmatpush.bf16.msrb.mxu1 %v764_v59 }
  0x41   :  { %489 = vmatmul.bf16.vlgmr.msrb.gmra.mxu0 %v26_v61 }
  0x42   :  { %502 = vmatmul.bf16.vlgmr.msrb.gmra.mxu1 %v27_v62 }
  0x9e   :  { %v438_v63 = vpop.f32.mrf.mxu0 }
  0x9f   :  { %v451_v0 = vpop.f32.mrf.mxu1  ;;  %v439_v7 = vadd.f32 %v773_v5, %v438_v63 }
  0xa1   :  { %v452_v9 = vadd.f32 %v451_v0, %v439_v7 }
  0xa6   :  { %v464_v1 = vpop.f32.mrf.mxu2  ;;  %v440_v2 = vpop.f32.mrf.mxu0 }
  0xa7   :  { %v453_v3 = vpop.f32.mrf.mxu1  ;;  %v477_v4 = vpop.f32.mrf.mxu3  ;;  %v465_v11 = vadd.f32 %v464_v1, %v452_v9 }
  0xa9   :  { %v478_v12 = vadd.f32 %v477_v4, %v465_v11 }
  0xae   :  { %v466_v6 = vpop.f32.mrf.mxu2 }
  0xaf   :  { %v479_v8 = vpop.f32.mrf.mxu3 }
  0xb6   :  { %v516_v10 = vpop.f32.mrf.mxu2 }
  0xbe   :  { %v490_v13 = vpop.f32.mrf.mxu0  ;;  %v518_v16 = vpop.f32.mrf.mxu2 }
  0xbf   :  { %v491_v14 = vadd.f32 %v490_v13, %v478_v12  ;;  %v503_v15 = vpop.f32.mrf.mxu1 }
  0xc1   :  { %v504_v17 = vadd.f32 %v503_v15, %v491_v14 }
  0xc3   :  { %v517_v18 = vadd.f32 %v516_v10, %v504_v17 }
  0xc5   :  { %v520_v19 = vmax.f32 %v517_v18, 0.0 }
  0xc6   :  { %v492_v20 = vpop.f32.mrf.mxu0 }
  0xc7   :  { %522 = vst.msk [vmem:[%s971_s3] sm:$0xff] %vm521_vm1, %v520_v19  ;;  %v505_v21 = vpop.f32.mrf.mxu1 }

</bundles_post_ra>
